<compile_context>
chip_gen: v7x
topology: tpu7x:2x2x1
jax: 0.10.0
libtpu: 0.0.40
codegen_flags: <defaults>
</compile_context>

<pallas_src>
import jax
import jax.numpy as jnp
from jax.experimental import pallas as pl
from jax.experimental.pallas import tpu as pltpu

IN_DIM = 784
HID_DIM = 256
OUT_DIM = 10
OUT_PAD = 128     # lane-dense output slab
NEG_BIG = -1e30   # bias for padded logit columns -> exp underflows to 0


def mlp_kernel(x_ref, w1_ref, b1_ref, w2_ref, b2_ref, o_ref):
    # hidden = sigmoid(x @ W1 + b1) — bf16 MXU matmul, f32 accumulate.
    x_bf = x_ref[...].astype(jnp.bfloat16)        # in-kernel cast, hidden under DMA
    z = jnp.dot(x_bf, w1_ref[...], preferred_element_type=jnp.float32)
    z = z + b1_ref[...]                            # (bm,256) + (1,256)
    h = 0.5 * jnp.tanh(0.5 * z) + 0.5              # sigmoid, single EUP op, f32

    # logits = hidden @ W2 + b2  (W2/b2 padded to 128 output lanes;
    # padded W2 columns are exactly 0, padded b2 columns are -1e30).
    logits = jnp.dot(h.astype(jnp.bfloat16), w2_ref[...],
                     preferred_element_type=jnp.float32)
    logits = logits + b2_ref[...]

    # Numerically stable softmax over the padded last axis.
    # Exact f32 divide so rows sum to 1 to f32 rounding.
    m = jnp.max(logits, axis=-1, keepdims=True)
    e = jnp.exp(logits - m)
    denom = jnp.sum(e, axis=-1, keepdims=True)
    o_ref[...] = (e / denom).astype(o_ref.dtype)


def prepare_params(w1, b1, w2, b2):
    """One-time padding + bf16 cast of the weights (hoisted out of the call path).

    w1: (784, 256), b1: (1, 256), w2: (256, 10), b2: (1, 10) — all f32,
    stored transposed vs. PyTorch (in_features, out_features).
    """
    w1_p = w1.astype(jnp.bfloat16)                                   # (784, 256)
    b1_p = b1.astype(jnp.float32)                                    # (1, 256)
    w2_p = jnp.zeros((HID_DIM, OUT_PAD), jnp.bfloat16).at[:, :OUT_DIM].set(
        w2.astype(jnp.bfloat16))                                     # (256, 128)
    b2_p = jnp.full((1, OUT_PAD), NEG_BIG, jnp.float32).at[:, :OUT_DIM].set(
        b2.astype(jnp.float32))                                      # (1, 128)
    return w1_p, b1_p, w2_p, b2_p


def mlp_forward(x, w1_p, b1_p, w2_p, b2_p, *, bm=None):
    """x: (B, 784) f32; params pre-padded/cast by prepare_params().

    Returns (B, 10) f32 softmax probabilities.
    """
    B = x.shape[0]
    if bm is None:
        bm = B                      # single grid step for the whole batch
    assert B % bm == 0, "batch must be divisible by the batch tile"

    grid = (B // bm,)
    out_padded = pl.pallas_call(
        mlp_kernel,
        out_shape=jax.ShapeDtypeStruct((B, OUT_PAD), jnp.float32),
        grid_spec=pltpu.PrefetchScalarGridSpec(
            num_scalar_prefetch=0,
            grid=grid,
            in_specs=[
                pl.BlockSpec((bm, IN_DIM), lambda i: (i, 0)),        # x tile (full K)
                pl.BlockSpec((IN_DIM, HID_DIM), lambda i: (0, 0)),   # W1 (full)
                pl.BlockSpec((1, HID_DIM), lambda i: (0, 0)),        # b1
                pl.BlockSpec((HID_DIM, OUT_PAD), lambda i: (0, 0)),  # W2 (full)
                pl.BlockSpec((1, OUT_PAD), lambda i: (0, 0)),        # b2
            ],
            out_specs=pl.BlockSpec((bm, OUT_PAD), lambda i: (i, 0)),
        ),
        compiler_params=pltpu.CompilerParams(
            dimension_semantics=("parallel",),
        ),
    )(x, w1_p, b1_p, w2_p, b2_p)
    return out_padded[:, :OUT_DIM]


def init_params(key):
    """PyTorch nn.Linear-style init: U(-1/sqrt(fan_in), +1/sqrt(fan_in))."""
    k1, k2, k3, k4 = jax.random.split(key, 4)
    lim1 = 1.0 / (IN_DIM ** 0.5)
    lim2 = 1.0 / (HID_DIM ** 0.5)
    w1 = jax.random.uniform(k1, (IN_DIM, HID_DIM), jnp.float32, -lim1, lim1)
    b1 = jax.random.uniform(k2, (1, HID_DIM), jnp.float32, -lim1, lim1)
    w2 = jax.random.uniform(k3, (HID_DIM, OUT_DIM), jnp.float32, -lim2, lim2)
    b2 = jax.random.uniform(k4, (1, OUT_DIM), jnp.float32, -lim2, lim2)
    return w1, b1, w2, b2


def reference_forward(x, w1, b1, w2, b2):
    h = jax.nn.sigmoid(x @ w1 + b1)
    return jax.nn.softmax(h @ w2 + b2, axis=1)


if __name__ == "__main__":
    key = jax.random.PRNGKey(0)
    kx, kp = jax.random.split(key)

    B = 64  # module hard-codes images.view(64, -1)
    x = jax.random.normal(kx, (B, IN_DIM), jnp.float32)
    w1, b1, w2, b2 = init_params(kp)

    # One-time (init-path) weight padding + bf16 cast.
    w1_p, b1_p, w2_p, b2_p = prepare_params(w1, b1, w2, b2)

    out = mlp_forward(x, w1_p, b1_p, w2_p, b2_p)
    out = jax.block_until_ready(out)

    ref = reference_forward(x, w1, b1, w2, b2)
    assert out.shape == (B, OUT_DIM)
    # bf16 matmul inputs -> loosened tolerance vs f32 reference.
    assert jnp.allclose(out, ref, atol=2e-2, rtol=0), "mismatch vs JAX reference"
    # Exact f32 normalization in-kernel -> rows sum to 1 to f32 rounding.
    assert jnp.allclose(jnp.sum(out, axis=1), 1.0, atol=1e-4), \
        "softmax rows must sum to ~1"

    print("KERNEL_OK")
</pallas_src>

<mosaic_0001>
module attributes {stable_mosaic.version = 11 : i64} {
  func.func @mlp_kernel(%arg0: i32, %arg1: memref<64x784xf32, #tpu.memory_space<vmem>>, %arg2: memref<784x256xbf16, #tpu.memory_space<vmem>>, %arg3: memref<1x256xf32, #tpu.memory_space<vmem>>, %arg4: memref<256x128xbf16, #tpu.memory_space<vmem>>, %arg5: memref<1x128xf32, #tpu.memory_space<vmem>>, %arg6: memref<64x128xf32, #tpu.memory_space<vmem>>) attributes {dimension_semantics = [#tpu.dimension_semantics<parallel>], iteration_bounds = array<i64: 1>, scalar_prefetch = 0 : i64, scratch_operands = 0 : i64, tpu.core_type = #tpu.core_type<tc>, window_params = [{transform_indices = @transform_0, window_bounds = array<i64: 64, 784>}, {pipeline_mode = #tpu.pipeline_mode<synchronous>, transform_indices = @transform_1, window_bounds = array<i64: 784, 256>}, {pipeline_mode = #tpu.pipeline_mode<synchronous>, transform_indices = @transform_2, window_bounds = array<i64: 1, 256>}, {pipeline_mode = #tpu.pipeline_mode<synchronous>, transform_indices = @transform_3, window_bounds = array<i64: 256, 128>}, {pipeline_mode = #tpu.pipeline_mode<synchronous>, transform_indices = @transform_4, window_bounds = array<i64: 1, 128>}, {transform_indices = @transform_5, window_bounds = array<i64: 64, 128>}]} {
    %c0 = arith.constant 0 : index
    %c0_0 = arith.constant 0 : index
    %0 = vector.load %arg1[%c0, %c0_0] : memref<64x784xf32, #tpu.memory_space<vmem>>, vector<64x784xf32>
    %1 = arith.truncf %0 : vector<64x784xf32> to vector<64x784xbf16>
    %c0_1 = arith.constant 0 : index
    %c0_2 = arith.constant 0 : index
    %2 = vector.load %arg2[%c0_1, %c0_2] : memref<784x256xbf16, #tpu.memory_space<vmem>>, vector<784x256xbf16>
    %cst = arith.constant dense<0.000000e+00> : vector<64x256xf32>
    %3 = tpu.matmul %1, %2, %cst {dimension_numbers = #tpu.dot_dimension_numbers<[1], [0], [0], [1], [0, 0, 1, 1], [], []>} : vector<64x784xbf16>, vector<784x256xbf16>, vector<64x256xf32> -> vector<64x256xf32>
    %c0_3 = arith.constant 0 : index
    %c0_4 = arith.constant 0 : index
    %4 = vector.load %arg3[%c0_3, %c0_4] : memref<1x256xf32, #tpu.memory_space<vmem>>, vector<1x256xf32>
    %5 = vector.broadcast %4 : vector<1x256xf32> to vector<64x256xf32>
    %6 = arith.addf %3, %5 : vector<64x256xf32>
    %cst_5 = arith.constant 5.000000e-01 : f32
    %7 = vector.broadcast %cst_5 : f32 to vector<64x256xf32>
    %8 = arith.mulf %7, %6 : vector<64x256xf32>
    %9 = math.tanh %8 : vector<64x256xf32>
    %cst_6 = arith.constant 5.000000e-01 : f32
    %10 = vector.broadcast %cst_6 : f32 to vector<64x256xf32>
    %11 = arith.mulf %10, %9 : vector<64x256xf32>
    %cst_7 = arith.constant 5.000000e-01 : f32
    %12 = vector.broadcast %cst_7 : f32 to vector<64x256xf32>
    %13 = arith.addf %11, %12 : vector<64x256xf32>
    %14 = arith.truncf %13 : vector<64x256xf32> to vector<64x256xbf16>
    %c0_8 = arith.constant 0 : index
    %c0_9 = arith.constant 0 : index
    %15 = vector.load %arg4[%c0_8, %c0_9] : memref<256x128xbf16, #tpu.memory_space<vmem>>, vector<256x128xbf16>
    %cst_10 = arith.constant dense<0.000000e+00> : vector<64x128xf32>
    %16 = tpu.matmul %14, %15, %cst_10 {dimension_numbers = #tpu.dot_dimension_numbers<[1], [0], [0], [1], [0, 0, 1, 1], [], []>} : vector<64x256xbf16>, vector<256x128xbf16>, vector<64x128xf32> -> vector<64x128xf32>
    %c0_11 = arith.constant 0 : index
    %c0_12 = arith.constant 0 : index
    %17 = vector.load %arg5[%c0_11, %c0_12] : memref<1x128xf32, #tpu.memory_space<vmem>>, vector<1x128xf32>
    %18 = vector.broadcast %17 : vector<1x128xf32> to vector<64x128xf32>
    %19 = arith.addf %16, %18 : vector<64x128xf32>
    %cst_13 = arith.constant dense<0xFF800000> : vector<64xf32>
    %20 = vector.multi_reduction <maximumf>, %19, %cst_13 [1] : vector<64x128xf32> to vector<64xf32>
    %21 = vector.shape_cast %20 : vector<64xf32> to vector<64x1xf32>
    %22 = vector.broadcast %21 : vector<64x1xf32> to vector<64x128xf32>
    %23 = arith.subf %19, %22 : vector<64x128xf32>
    %24 = math.exp %23 : vector<64x128xf32>
    %cst_14 = arith.constant dense<0.000000e+00> : vector<64xf32>
    %25 = vector.multi_reduction <add>, %24, %cst_14 [1] : vector<64x128xf32> to vector<64xf32>
    %26 = vector.shape_cast %25 : vector<64xf32> to vector<64x1xf32>
    %27 = vector.broadcast %26 : vector<64x1xf32> to vector<64x128xf32>
    %28 = arith.divf %24, %27 : vector<64x128xf32>
    %c0_15 = arith.constant 0 : index
    %c0_16 = arith.constant 0 : index
    %29 = vector.load %arg6[%c0_15, %c0_16] : memref<64x128xf32, #tpu.memory_space<vmem>>, vector<64x128xf32>
    tpu.vector_store %arg6[%c0_15, %c0_16], %28 {strides = array<i32>} : memref<64x128xf32, #tpu.memory_space<vmem>>, vector<64x128xf32>,
    return
  }
  func.func @transform_0(%arg0: i32) -> (i32, i32) {
    %c0_i32 = arith.constant 0 : i32
    %c0_i32_0 = arith.constant 0 : i32
    return %arg0, %c0_i32 : i32, i32
  }
  func.func @transform_1(%arg0: i32) -> (i32, i32) {
    %c0_i32 = arith.constant 0 : i32
    %c0_i32_0 = arith.constant 0 : i32
    %c0_i32_1 = arith.constant 0 : i32
    return %c0_i32, %c0_i32_0 : i32, i32
  }
  func.func @transform_2(%arg0: i32) -> (i32, i32) {
    %c0_i32 = arith.constant 0 : i32
    %c0_i32_0 = arith.constant 0 : i32
    %c0_i32_1 = arith.constant 0 : i32
    return %c0_i32, %c0_i32_0 : i32, i32
  }
  func.func @transform_3(%arg0: i32) -> (i32, i32) {
    %c0_i32 = arith.constant 0 : i32
    %c0_i32_0 = arith.constant 0 : i32
    %c0_i32_1 = arith.constant 0 : i32
    return %c0_i32, %c0_i32_0 : i32, i32
  }
  func.func @transform_4(%arg0: i32) -> (i32, i32) {
    %c0_i32 = arith.constant 0 : i32
    %c0_i32_0 = arith.constant 0 : i32
    %c0_i32_1 = arith.constant 0 : i32
    return %c0_i32, %c0_i32_0 : i32, i32
  }
  func.func @transform_5(%arg0: i32) -> (i32, i32) {
    %c0_i32 = arith.constant 0 : i32
    %c0_i32_0 = arith.constant 0 : i32
    return %arg0, %c0_i32 : i32, i32
  }
}

</mosaic_0001>

<bundles_post_ra>
// kernel: tpu_custom_call.1
= control target key start
LH: loop header
LB: loop body
LE: loop exit
PB: predicated region body
PF: predicated region fallthrough
CT: control target
= control target key end

     0   :  { %10 = vsyncpa [#allocation3], 0  ;;  %s2150_s0 = inlined_call_operand.hbm [shape: f32[64,784], index: 0, kind: input, shape index: {}]   ;;  %s2151_s1 = inlined_call_operand.hbm [shape: bf16[784,256], index: 1, kind: input, shape index: {}]   ;;  %s2152_s2 = inlined_call_operand.vmem [shape: f32[1,256], index: 2, kind: input, shape index: {}]   ;;  %s2153_s3 = inlined_call_operand.hbm [shape: bf16[256,128], index: 3, kind: input, shape index: {}]   ;;  %s2154_s4 = inlined_call_operand.vmem [shape: f32[1,128], index: 4, kind: input, shape index: {}]   ;;  %s2155_s5 = inlined_call_operand.hbm [shape: f32[64,128], index: 5, kind: output, shape index: {}]  }
   0x1   :  { %11 = vsyncpa [#allocation6], 0 }
   0x2   :  { %12 = vsyncpa [#allocation4], 0  ;;  %s1977_s18 = smov [#allocation5]   ;;  %s1883_s22 = scalar_lea.hbm %s2151_s1, 12544 }
   0x3   :  { %s30_s19 = sshll.u32 %s1977_s18, 4  ;;  %p1884_p0 = scmp.ne.s32.totalorder %s2151_s1, %s1883_s22  ;;  %s31_s19 = int_to_ptr.vmem [resolvable:$true] %s30_s19 }
   0x4   :  { %p1887_p1 = scmp.lt.u32.totalorder %s1883_s22, %s2151_s1 }
   0x6   :  { %p1889_p2 = pnand %p1887_p1, %p1884_p0 }
   0x8   :  { %1892 = shalt.err (!%p1889_p2)
}
   0x9   :  { %s1893_s27 = scalar_lea.vmem %s31_s19, 12544  ;;  %p1898_p4 = scmp.lt.s32.totalorder %s31_s19, %s31_s19 }
   0xa   :  { %p1894_p3 = scmp.ne.s32.totalorder %s31_s19, %s1893_s27  ;;  %p1899_p5 = scmp.lt.s32.totalorder %s1893_s27, %s1893_s27 }
   0xc   :  { %p1900_p6 = por %p1899_p5, %p1898_p4 }
   0xe   :  { %p1901_p7 = pnand %p1900_p6, %p1894_p3 }
  0x10   :  { %1904 = shalt.err (!%p1901_p7)
}
  0x11   :  { %s1978_s28 = smov 128   ;;  %s1979_s29 = smov 8  }
  0x12   :  { %36 = dma.hbm_to_vmem [thread:$0]  %s2151_s1, 12544, %s31_s19, [#allocation6], %s1978_s28, %s1978_s28, %s1979_s29  }
  0x13   :  { %s1980_s7 = smov [#allocation2]   ;;  %s1905_s11 = scalar_lea.hbm %s2150_s0, 7168 }
  0x14   :  { %s18_s8 = sshll.u32 %s1980_s7, 4  ;;  %p1906_p8 = scmp.ne.s32.totalorder %s2150_s0, %s1905_s11  ;;  %s19_s8 = int_to_ptr.vmem [resolvable:$true] %s18_s8 }
  0x15   :  { %p1909_p9 = scmp.lt.u32.totalorder %s1905_s11, %s2150_s0 }
  0x17   :  { %p1911_p10 = pnand %p1909_p9, %p1906_p8 }
  0x19   :  { %1914 = shalt.err (!%p1911_p10)
}
  0x1a   :  { %s1915_s16 = scalar_lea.vmem %s19_s8, 7168  ;;  %p1920_p12 = scmp.lt.s32.totalorder %s19_s8, %s19_s8 }
  0x1b   :  { %p1916_p11 = scmp.ne.s32.totalorder %s19_s8, %s1915_s16  ;;  %p1921_p13 = scmp.lt.s32.totalorder %s1915_s16, %s1915_s16 }
  0x1d   :  { %p1922_p0 = por %p1921_p13, %p1920_p12 }
  0x1f   :  { %p1923_p1 = pnand %p1922_p0, %p1916_p11 }
  0x21   :  { %1926 = shalt.err (!%p1923_p1)
}
  0x22   :  { %s1981_s1 = smov 896   ;;  %s1982_s17 = smov 56  }
  0x23   :  { %24 = dma.hbm_to_vmem [thread:$0]  %s2150_s0, 7168, %s19_s8, [#allocation3], %s1981_s1, %s1981_s1, %s1982_s17  }
  0x24   :  { %s1983_s20 = smov [#allocation7]   ;;  %s1927_s24 = scalar_lea.hbm %s2153_s3, 2048 }
  0x25   :  { %s44_s21 = sshll.u32 %s1983_s20, 4  ;;  %p1928_p2 = scmp.ne.s32.totalorder %s2153_s3, %s1927_s24  ;;  %s45_s21 = int_to_ptr.vmem [resolvable:$true] %s44_s21 }
  0x26   :  { %p1931_p3 = scmp.lt.u32.totalorder %s1927_s24, %s2153_s3 }
  0x28   :  { %p1933_p4 = pnand %p1931_p3, %p1928_p2 }
  0x2a   :  { %1936 = shalt.err (!%p1933_p4)
}
  0x2b   :  { %s1937_s6 = scalar_lea.vmem %s45_s21, 2048  ;;  %p1942_p6 = scmp.lt.s32.totalorder %s45_s21, %s45_s21 }
  0x2c   :  { %p1938_p5 = scmp.ne.s32.totalorder %s45_s21, %s1937_s6  ;;  %p1943_p7 = scmp.lt.s32.totalorder %s1937_s6, %s1937_s6 }
  0x2e   :  { %p1944_p8 = por %p1943_p7, %p1942_p6 }
  0x30   :  { %p1945_p9 = pnand %p1944_p8, %p1938_p5 }
  0x32   :  { %1948 = shalt.err (!%p1945_p9)
}
  0x33   :  { %s1984_s0 = smov 64   ;;  %s1985_s7 = smov 4  }
  0x34   :  { %50 = dma.hbm_to_vmem [thread:$0]  %s2153_s3, 2048, %s45_s21, [#allocation6], %s1984_s0, %s1984_s0, %s1985_s7  }
  0x35   :  { %1971 = dma.done.wait [#allocation3], 7168  }
  0x36   :  { %1972 = vsyncadd [#allocation3], 4294960128 }
  0x37   :  { %1973 = dma.done.wait [#allocation6], 14592  }
  0x38   :  { %1974 = vsyncadd [#allocation6], 4294952704  ;;  %v1656_v0 = vld [vmem:[#allocation5 + $0x104] ss:$8 sps:$4 sm:$0xff]   ;;  %v1658_v1 = vld [vmem:[#allocation5 + $0x100] ss:$8 sps:$4 sm:$0xff]  }
  0x39   :  { %833 = vmatprep.subr.bf16.mxu0 %v1656_v0  ;;  %v1659_v2 = vld [vmem:[#allocation5 + $0x114] ss:$8 sps:$4 sm:$0xff]   ;;  %v1661_v3 = vld [vmem:[#allocation5 + $0x110] ss:$8 sps:$4 sm:$0xff]   ;;  %v1662_v4 = vld [vmem:[#allocation5 + $0x124] ss:$8 sps:$4 sm:$0xff]  }
  0x3a   :  { %834 = vmatpush1.bf16.msra.mxu0 %v1658_v1  ;;  %v1664_v5 = vld [vmem:[#allocation5 + $0x120] ss:$8 sps:$4 sm:$0xff]   ;;  %v1665_v6 = vld [vmem:[#allocation5 + $0x134] ss:$8 sps:$4 sm:$0xff]   ;;  %v1667_v7 = vld [vmem:[#allocation5 + $0x130] ss:$8 sps:$4 sm:$0xff]  }
  0x3b   :  { %835 = vmatprep.subr.bf16.mxu0 %v1659_v2  ;;  %v1680_v8 = vld [vmem:[#allocation5 + $0x4] ss:$8 sps:$4 sm:$0xff]   ;;  %v1682_v9 = vld [vmem:[#allocation5] ss:$8 sps:$4 sm:$0xff]   ;;  %v1686_v11 = vld [vmem:[#allocation5 + $0x14] ss:$8 sps:$4 sm:$0xff]  }
  0x3c   :  { %v1668_v10 = vld [vmem:[#allocation5 + $0x144] ss:$8 sps:$4 sm:$0xff]   ;;  %760 = vmatprep.subr.bf16.mxu1 %v1680_v8  ;;  %v1688_v12 = vld [vmem:[#allocation5 + $0x10] ss:$8 sps:$4 sm:$0xff]   ;;  %v1670_v13 = vld [vmem:[#allocation5 + $0x140] ss:$8 sps:$4 sm:$0xff]  }
  0x3d   :  { %761 = vmatpush1.bf16.msra.mxu1 %v1682_v9  ;;  %v1671_v14 = vld [vmem:[#allocation5 + $0x154] ss:$8 sps:$4 sm:$0xff]   ;;  %v1692_v15 = vld [vmem:[#allocation5 + $0x24] ss:$8 sps:$4 sm:$0xff]   ;;  %v1694_v16 = vld [vmem:[#allocation5 + $0x20] ss:$8 sps:$4 sm:$0xff]  }
  0x3e   :  { %836 = vmatpush1.bf16.msra.mxu0 %v1661_v3  ;;  %762 = vmatprep.subr.bf16.mxu1 %v1686_v11  ;;  %v1673_v17 = vld [vmem:[#allocation5 + $0x150] ss:$8 sps:$4 sm:$0xff]   ;;  %v1698_v18 = vld [vmem:[#allocation5 + $0x34] ss:$8 sps:$4 sm:$0xff]   ;;  %v1674_v19 = vld [vmem:[#allocation5 + $0x164] ss:$8 sps:$4 sm:$0xff]  }
  0x3f   :  { %837 = vmatprep.subr.bf16.mxu0 %v1662_v4  ;;  %v1700_v20 = vld [vmem:[#allocation5 + $0x30] ss:$8 sps:$4 sm:$0xff]   ;;  %v1676_v21 = vld [vmem:[#allocation5 + $0x160] ss:$8 sps:$4 sm:$0xff]   ;;  %v1704_v22 = vld [vmem:[#allocation5 + $0x44] ss:$8 sps:$4 sm:$0xff]  }
  0x40   :  { %v1677_v23 = vld [vmem:[#allocation5 + $0x174] ss:$8 sps:$4 sm:$0xff]   ;;  %v1706_v24 = vld [vmem:[#allocation5 + $0x40] ss:$8 sps:$4 sm:$0xff]   ;;  %v1679_v25 = vld [vmem:[#allocation5 + $0x170] ss:$8 sps:$4 sm:$0xff]  }
  0x41   :  { %763 = vmatpush1.bf16.msra.mxu1 %v1688_v12  ;;  %v1710_v26 = vld [vmem:[#allocation5 + $0x54] ss:$8 sps:$4 sm:$0xff]   ;;  %v1683_v27 = vld [vmem:[#allocation5 + $0x184] ss:$8 sps:$4 sm:$0xff]   ;;  %v1712_v28 = vld [vmem:[#allocation5 + $0x50] ss:$8 sps:$4 sm:$0xff]  }
  0x42   :  { %838 = vmatpush1.bf16.msra.mxu0 %v1664_v5  ;;  %764 = vmatprep.subr.bf16.mxu1 %v1692_v15  ;;  %v1685_v29 = vld [vmem:[#allocation5 + $0x180] ss:$8 sps:$4 sm:$0xff]   ;;  %v1716_v30 = vld [vmem:[#allocation5 + $0x64] ss:$8 sps:$4 sm:$0xff]   ;;  %v1689_v31 = vld [vmem:[#allocation5 + $0x194] ss:$8 sps:$4 sm:$0xff]  }
  0x43   :  { %839 = vmatprep.subr.bf16.mxu0 %v1665_v6  ;;  %v66_v32 = vld [vmem:[#allocation2 + $0x18] sm:$0xff]  ;;  %v73_v33 = vld [vmem:[#allocation2 + $0x50] sm:$0xff]  ;;  %v1718_v34 = vld [vmem:[#allocation5 + $0x60] ss:$8 sps:$4 sm:$0xff]   ;;  %vm747_vm0 = vcmask 130048  }
  0x44   :  { %v122_v35 = vpack.c.bf16 %v73_v33, %v66_v32  ;;  %v1691_v36 = vld [vmem:[#allocation5 + $0x190] ss:$8 sps:$4 sm:$0xff]   ;;  %v1722_v37 = vld [vmem:[#allocation5 + $0x74] ss:$8 sps:$4 sm:$0xff]   ;;  %v1695_v38 = vld [vmem:[#allocation5 + $0x1a4] ss:$8 sps:$4 sm:$0xff]  }
  0x45   :  { %765 = vmatpush1.bf16.msra.mxu1 %v1694_v16  ;;  %v1724_v39 = vld [vmem:[#allocation5 + $0x70] ss:$8 sps:$4 sm:$0xff]   ;;  %v1697_v40 = vld [vmem:[#allocation5 + $0x1a0] ss:$8 sps:$4 sm:$0xff]   ;;  %v1728_v41 = vld [vmem:[#allocation5 + $0x84] ss:$8 sps:$4 sm:$0xff]  }
  0x46   :  { %840 = vmatpush1.bf16.msra.mxu0 %v1667_v7  ;;  %766 = vmatprep.subr.bf16.mxu1 %v1698_v18  ;;  %v1701_v42 = vld [vmem:[#allocation5 + $0x1b4] ss:$8 sps:$4 sm:$0xff]   ;;  %v1730_v43 = vld [vmem:[#allocation5 + $0x80] ss:$8 sps:$4 sm:$0xff]   ;;  %v1703_v44 = vld [vmem:[#allocation5 + $0x1b0] ss:$8 sps:$4 sm:$0xff]  }
  0x47   :  { %841 = vmatprep.subr.bf16.mxu0 %v1668_v10  ;;  %865 = vmatprep.mubr.bf16.mxu0 %v122_v35  ;;  %v1734_v45 = vld [vmem:[#allocation5 + $0x94] ss:$8 sps:$4 sm:$0xff]   ;;  %v1707_v46 = vld [vmem:[#allocation5 + $0x1c4] ss:$8 sps:$4 sm:$0xff]   ;;  %v1736_v47 = vld [vmem:[#allocation5 + $0x90] ss:$8 sps:$4 sm:$0xff]  }
  0x48   :  { %v1709_v48 = vld [vmem:[#allocation5 + $0x1c0] ss:$8 sps:$4 sm:$0xff]   ;;  %v1740_v49 = vld [vmem:[#allocation5 + $0xa4] ss:$8 sps:$4 sm:$0xff]   ;;  %v1713_v50 = vld [vmem:[#allocation5 + $0x1d4] ss:$8 sps:$4 sm:$0xff]  }
  0x49   :  { %767 = vmatpush1.bf16.msra.mxu1 %v1700_v20  ;;  %v1742_v51 = vld [vmem:[#allocation5 + $0xa0] ss:$8 sps:$4 sm:$0xff]   ;;  %v1715_v52 = vld [vmem:[#allocation5 + $0x1d0] ss:$8 sps:$4 sm:$0xff]   ;;  %v1746_v53 = vld [vmem:[#allocation5 + $0xb4] ss:$8 sps:$4 sm:$0xff]  }
  0x4a   :  { %842 = vmatpush1.bf16.msra.mxu0 %v1670_v13  ;;  %768 = vmatprep.subr.bf16.mxu1 %v1704_v22  ;;  %v1719_v54 = vld [vmem:[#allocation5 + $0x1e4] ss:$8 sps:$4 sm:$0xff]   ;;  %v1748_v55 = vld [vmem:[#allocation5 + $0xb0] ss:$8 sps:$4 sm:$0xff]   ;;  %v1721_v57 = vld [vmem:[#allocation5 + $0x1e0] ss:$8 sps:$4 sm:$0xff]  }
  0x4b   :  { %843 = vmatprep.subr.bf16.mxu0 %v1671_v14  ;;  %v64_v56 = vld [vmem:[#allocation2 + $0x8] sm:$0xff]  ;;  %v71_v59 = vld [vmem:[#allocation2 + $0x40] sm:$0xff]  ;;  %v1725_v60 = vld [vmem:[#allocation5 + $0x1f4] ss:$8 sps:$4 sm:$0xff]  }
  0x4c   :  { %v1752_v58 = vld [vmem:[#allocation5 + $0xc4] ss:$8 sps:$4 sm:$0xff]   ;;  %v120_v61 = vpack.c.bf16 %v71_v59, %v64_v56  ;;  %v1727_v62 = vld [vmem:[#allocation5 + $0x1f0] ss:$8 sps:$4 sm:$0xff]   ;;  %v1754_v0 = vld [vmem:[#allocation5 + $0xc0] ss:$8 sps:$4 sm:$0xff]  }
  0x4d   :  { %769 = vmatpush1.bf16.msra.mxu1 %v1706_v24  ;;  %v65_v63 = vld [vmem:[#allocation2 + $0x10] sm:$0xff]  ;;  %v72_v1 = vld [vmem:[#allocation2 + $0x48] sm:$0xff]  ;;  %v87_v5 = vld [vmem:[#allocation2 + $0xc0] sm:$0xff] }
  0x4e   :  { %844 = vmatpush1.bf16.msra.mxu0 %v1673_v17  ;;  %770 = vmatprep.subr.bf16.mxu1 %v1710_v26  ;;  %v1758_v2 = vld [vmem:[#allocation5 + $0xd4] ss:$8 sps:$4 sm:$0xff]   ;;  %v1733_v3 = vld [vmem:[#allocation5 + $0x204] ss:$8 sps:$4 sm:$0xff]   ;;  %v121_v6 = vpack.c.bf16 %v72_v1, %v65_v63  ;;  %v1760_v7 = vld [vmem:[#allocation5 + $0xd0] ss:$8 sps:$4 sm:$0xff]  }
  0x4f   :  { %845 = vmatprep.subr.bf16.mxu0 %v1674_v19  ;;  %792 = vmatprep.mubr.bf16.mxu1 %v120_v61  ;;  %v80_v4 = vld [vmem:[#allocation2 + $0x88] sm:$0xff]  ;;  %v1739_v10 = vld [vmem:[#allocation5 + $0x214] ss:$8 sps:$4 sm:$0xff]   ;;  %v1737_v12 = vld [vmem:[#allocation5 + $0x210] ss:$8 sps:$4 sm:$0xff]  }
  0x50   :  { %v1731_v8 = vld [vmem:[#allocation5 + $0x200] ss:$8 sps:$4 sm:$0xff]   ;;  %v1764_v9 = vld [vmem:[#allocation5 + $0xe4] ss:$8 sps:$4 sm:$0xff]   ;;  %v129_v11 = vpack.c.bf16 %v87_v5, %v80_v4  ;;  %v1770_v15 = vld [vmem:[#allocation5 + $0xf4] ss:$8 sps:$4 sm:$0xff]  }
  0x51   :  { %771 = vmatpush1.bf16.msra.mxu1 %v1712_v28  ;;  %v1745_v13 = vld [vmem:[#allocation5 + $0x224] ss:$8 sps:$4 sm:$0xff]   ;;  %v1766_v14 = vld [vmem:[#allocation5 + $0xe0] ss:$8 sps:$4 sm:$0xff]   ;;  %v86_v17 = vld [vmem:[#allocation2 + $0xb8] sm:$0xff] }
  0x52   :  { %846 = vmatpush1.bf16.msra.mxu0 %v1676_v21  ;;  %772 = vmatprep.subr.bf16.mxu1 %v1716_v30  ;;  %v79_v16 = vld [vmem:[#allocation2 + $0x80] sm:$0xff]  ;;  %v94_v18 = vld [vmem:[#allocation2 + $0xf8] sm:$0xff]  ;;  %v101_v20 = vld [vmem:[#allocation2 + $0x130] sm:$0xff] }
  0x53   :  { %847 = vmatprep.subr.bf16.mxu0 %v1677_v23  ;;  %v1743_v19 = vld [vmem:[#allocation5 + $0x220] ss:$8 sps:$4 sm:$0xff]   ;;  %v1772_v21 = vld [vmem:[#allocation5 + $0xf0] ss:$8 sps:$4 sm:$0xff]   ;;  %v128_v24 = vpack.c.bf16 %v86_v17, %v79_v16  ;;  %v1751_v28 = vld [vmem:[#allocation5 + $0x234] ss:$8 sps:$4 sm:$0xff]  }
  0x54   :  { %v63_v22 = vld [vmem:[#allocation2] sm:$0xff]  ;;  %v70_v23 = vld [vmem:[#allocation2 + $0x38] sm:$0xff]  ;;  %v100_v35 = vld [vmem:[#allocation2 + $0x128] sm:$0xff] }
  0x55   :  { %773 = vmatpush1.bf16.msra.mxu1 %v1718_v34  ;;  %v78_v26 = vld [vmem:[#allocation2 + $0x78] sm:$0xff]  ;;  %v119_v30 = vpack.c.bf16 %v70_v23, %v63_v22  ;;  %v1779_v32 = vld [vmem:[#allocation5 + $0x300] ss:$8 sps:$4 sm:$0xff]   ;;  %v93_v34 = vld [vmem:[#allocation2 + $0xf0] sm:$0xff] }
  0x56   :  { %848 = vmatpush1.bf16.msra.mxu0 %v1679_v25  ;;  %774 = vmatprep.subr.bf16.mxu1 %v1722_v37  ;;  %v1781_v25 = vld [vmem:[#allocation5 + $0x304] ss:$8 sps:$4 sm:$0xff]   ;;  %v113_v59 = vld [vmem:[#allocation2 + $0x190] sm:$0xff]  ;;  %v1776_v5 = vld [vmem:[#allocation5 + $0x280] ss:$8 sps:$4 sm:$0xff]  }
  0x57   :  { %849 = vmatprep.subr.bf16.mxu0 %v1683_v27  ;;  %v85_v27 = vld [vmem:[#allocation2 + $0xb0] sm:$0xff]  ;;  %v108_v37 = vld [vmem:[#allocation2 + $0x168] sm:$0xff]  ;;  %v75_v56 = vld [vmem:[#allocation2 + $0x60] sm:$0xff] }
  0x58   :  { %v127_v33 = vpack.c.bf16 %v85_v27, %v78_v26  ;;  %v1773_v63 = vld [vmem:[#allocation5 + $0x270] ss:$8 sps:$4 sm:$0xff]   ;;  %v1778_v1 = vld [vmem:[#allocation5 + $0x284] ss:$8 sps:$4 sm:$0xff]   ;;  %v1797_v27 = vld [vmem:[#allocation5 + $0x2e0] ss:$8 sps:$4 sm:$0xff]  }
  0x59   :  { %775 = vmatpush1.bf16.msra.mxu1 %v1724_v39  ;;  %v77_v39 = vld [vmem:[#allocation2 + $0x70] sm:$0xff]  ;;  %v112_v4 = vld [vmem:[#allocation2 + $0x188] sm:$0xff] }
  0x5a   :  { %850 = vmatpush1.bf16.msra.mxu0 %v1685_v29  ;;  %776 = vmatprep.subr.bf16.mxu1 %v1728_v41  ;;  %v136_v29 = vpack.c.bf16 %v101_v20, %v94_v18  ;;  %v135_v41 = vpack.c.bf16 %v100_v35, %v93_v34  ;;  %v1788_v16 = vld [vmem:[#allocation5 + $0x2b0] ss:$8 sps:$4 sm:$0xff]   ;;  %v1793_v17 = vld [vmem:[#allocation5 + $0x2c4] ss:$8 sps:$4 sm:$0xff]   ;;  %v1791_v20 = vld [vmem:[#allocation5 + $0x2c0] ss:$8 sps:$4 sm:$0xff]  }
  0x5b   :  { %851 = vmatprep.subr.bf16.mxu0 %v1689_v31  ;;  %v1749_v31 = vld [vmem:[#allocation5 + $0x230] ss:$8 sps:$4 sm:$0xff]   ;;  %v83_v18 = vld [vmem:[#allocation2 + $0xa0] sm:$0xff]  ;;  %v104_v26 = vld [vmem:[#allocation2 + $0x148] sm:$0xff] }
  0x5c   :  { %v1794_v23 = vld [vmem:[#allocation5 + $0x2d0] ss:$8 sps:$4 sm:$0xff]  }
  0x5d   :  { %777 = vmatpush1.bf16.msra.mxu1 %v1730_v43  ;;  %v92_v43 = vld [vmem:[#allocation2 + $0xe8] sm:$0xff]  ;;  %v89_v34 = vld [vmem:[#allocation2 + $0xd0] sm:$0xff] }
  0x5e   :  { %852 = vmatpush1.bf16.msra.mxu0 %v1691_v36  ;;  %778 = vmatprep.subr.bf16.mxu1 %v1734_v45  ;;  %v1757_v36 = vld [vmem:[#allocation5 + $0x244] ss:$8 sps:$4 sm:$0xff]  }
  0x5f   :  { %853 = vmatprep.subr.bf16.mxu0 %v1695_v38  ;;  %v115_v38 = vld [vmem:[#allocation2 + $0x1a0] sm:$0xff] }
  0x60   :  { %v143_v45 = vpack.c.bf16 %v115_v38, %v108_v37  ;;  %v118_v37 = vld [vmem:[#allocation2 + $0x1b8] sm:$0xff] }
  0x61   :  { %779 = vmatpush1.bf16.msra.mxu1 %v1736_v47 }
  0x62   :  { %854 = vmatpush1.bf16.msra.mxu0 %v1697_v40  ;;  %780 = vmatprep.subr.bf16.mxu1 %v1740_v49  ;;  %v84_v40 = vld [vmem:[#allocation2 + $0xa8] sm:$0xff] }
  0x63   :  { %855 = vmatprep.subr.bf16.mxu0 %v1701_v42  ;;  %v1755_v42 = vld [vmem:[#allocation5 + $0x240] ss:$8 sps:$4 sm:$0xff]   ;;  %v126_v47 = vpack.c.bf16 %v84_v40, %v77_v39  ;;  %v1769_v49 = vld [vmem:[#allocation5 + $0x264] ss:$8 sps:$4 sm:$0xff]   ;;  %v81_v40 = vld [vmem:[#allocation2 + $0x90] sm:$0xff] }
  0x65   :  { %781 = vmatpush1.bf16.msra.mxu1 %v1742_v51  ;;  %v107_v51 = vld [vmem:[#allocation2 + $0x160] sm:$0xff] }
  0x66   :  { %856 = vmatpush1.bf16.msra.mxu0 %v1703_v44  ;;  %782 = vmatprep.subr.bf16.mxu1 %v1746_v53  ;;  %v99_v44 = vld [vmem:[#allocation2 + $0x120] sm:$0xff]  ;;  %v68_v53 = vld [vmem:[#allocation2 + $0x28] sm:$0xff] }
  0x67   :  { %857 = vmatprep.subr.bf16.mxu0 %v1707_v46  ;;  %v1763_v46 = vld [vmem:[#allocation5 + $0x254] ss:$8 sps:$4 sm:$0xff]  }
  0x69   :  { %783 = vmatpush1.bf16.msra.mxu1 %v1748_v55  ;;  %v98_v55 = vld [vmem:[#allocation2 + $0x118] sm:$0xff] }
  0x6a   :  { %858 = vmatpush1.bf16.msra.mxu0 %v1709_v48  ;;  %784 = vmatprep.subr.bf16.mxu1 %v1752_v58  ;;  %v1761_v48 = vld [vmem:[#allocation5 + $0x250] ss:$8 sps:$4 sm:$0xff]  }
  0x6b   :  { %859 = vmatprep.subr.bf16.mxu0 %v1713_v50  ;;  %v134_v50 = vpack.c.bf16 %v99_v44, %v92_v43  ;;  %v106_v58 = vld [vmem:[#allocation2 + $0x158] sm:$0xff]  ;;  %v103_v43 = vld [vmem:[#allocation2 + $0x140] sm:$0xff] }
  0x6d   :  { %785 = vmatpush1.bf16.msra.mxu1 %v1754_v0 }
  0x6e   :  { %860 = vmatpush1.bf16.msra.mxu0 %v1715_v52  ;;  %786 = vmatprep.subr.bf16.mxu1 %v1758_v2  ;;  %v114_v52 = vld [vmem:[#allocation2 + $0x198] sm:$0xff]  ;;  %v141_v2 = vpack.c.bf16 %v113_v59, %v106_v58  ;;  %v1807_v59 = vld [vmem:[#allocation7 + $0x50] sm:$0xff]  }
  0x6f   :  { %861 = vmatprep.subr.bf16.mxu0 %v1719_v54  ;;  %v91_v54 = vld [vmem:[#allocation2 + $0xe0] sm:$0xff]  ;;  %v142_v61 = vpack.c.bf16 %v114_v52, %v107_v51  ;;  %v109_v52 = vld [vmem:[#allocation2 + $0x170] sm:$0xff]  ;;  %v1806_v58 = vld [vmem:[#allocation7 + $0x8] sm:$0xff]  }
  0x70   :  { %v133_v0 = vpack.c.bf16 %v98_v55, %v91_v54  ;;  %v1803_v55 = vld [vmem:[#allocation7 + $0x40] sm:$0xff]  }
  0x71   :  { %787 = vmatpush1.bf16.msra.mxu1 %v1760_v7 }
  0x72   :  { %862 = vmatpush1.bf16.msra.mxu0 %v1721_v57  ;;  %788 = vmatprep.subr.bf16.mxu1 %v1764_v9  ;;  %v1767_v57 = vld [vmem:[#allocation5 + $0x260] ss:$8 sps:$4 sm:$0xff]   ;;  %v1787_v9 = vld [vmem:[#allocation5 + $0x2a4] ss:$8 sps:$4 sm:$0xff]  }
  0x73   :  { %863 = vmatprep.subr.bf16.mxu0 %v1725_v60  ;;  %v1775_v60 = vld [vmem:[#allocation5 + $0x274] ss:$8 sps:$4 sm:$0xff]  }
  0x75   :  { %789 = vmatpush1.bf16.msra.mxu1 %v1766_v14  ;;  %v1790_v14 = vld [vmem:[#allocation5 + $0x2b4] ss:$8 sps:$4 sm:$0xff]  }
  0x76   :  { %864 = vmatpush1.bf16.msra.mxu0 %v1727_v62  ;;  %790 = vmatprep.subr.bf16.mxu1 %v1770_v15  ;;  %v124_v62 = vpack.c.bf16 %v75_v56, %v68_v53  ;;  %v116_v53 = vld [vmem:[#allocation2 + $0x1a8] sm:$0xff]  ;;  %v1804_v56 = vld [vmem:[#allocation7] sm:$0xff]  }
  0x77   :  { %906 = vmatprep.subr.bf16.mxu0 %v1733_v3  ;;  %v105_v3 = vld [vmem:[#allocation2 + $0x150] sm:$0xff]  ;;  %v144_v54 = vpack.c.bf16 %v116_v53, %v109_v52 }
  0x78   :  { %v140_v7 = vpack.c.bf16 %v112_v4, %v105_v3  ;;  %v1815_v3 = vld [vmem:[#allocation7 + $0x70] sm:$0xff]  }
  0x79   :  { %866 = vmatmul.mubr.bf16.vlgmr.msra.gmra.mrb[0].mxu0 %v121_v6  ;;  %791 = vmatpush1.bf16.msra.mxu1 %v1772_v21  ;;  %v1784_v6 = vld [vmem:[#allocation5 + $0x294] ss:$8 sps:$4 sm:$0xff]   ;;  %v1816_v4 = vld [vmem:[#allocation7 + $0x30] sm:$0xff]  }
  0x7a   :  { %907 = vmatpush1.bf16.msra.mxu0 %v1731_v8  ;;  %875 = vmatprep.mubr.bf16.mxu0 %v129_v11  ;;  %v1782_v8 = vld [vmem:[#allocation5 + $0x290] ss:$8 sps:$4 sm:$0xff]   ;;  %v1796_v21 = vld [vmem:[#allocation5 + $0x2d4] ss:$8 sps:$4 sm:$0xff]  }
  0x7b   :  { %908 = vmatprep.subr.bf16.mxu0 %v1739_v10  ;;  %979 = vmatprep.subr.bf16.mxu1 %v1781_v25  ;;  %v1986_v10 = vmov 0   ;;  %v69_v11 = vld [vmem:[#allocation2 + $0x30] sm:$0xff] }
  0x7c   :  { %793 = vmatmul.mubr.bf16.vlgmr.msra.gmra.mrb[0].mxu1 %v119_v30  ;;  %v97_v25 = vld [vmem:[#allocation2 + $0x110] sm:$0xff] }
  0x7d   :  { %980 = vmatpush1.bf16.msra.mxu1 %v1779_v32  ;;  %802 = vmatprep.mubr.bf16.mxu1 %v127_v33  ;;  %v1800_v30 = vld [vmem:[#allocation5 + $0x2f0] ss:$8 sps:$4 sm:$0xff]  }
  0x7e   :  { %909 = vmatpush1.bf16.msra.mxu0 %v1737_v12  ;;  %v76_v12 = vld [vmem:[#allocation2 + $0x68] sm:$0xff]  ;;  %v74_v32 = vld [vmem:[#allocation2 + $0x58] sm:$0xff]  ;;  %1541 = vmatprep.subr.bf16.mxu1 %v1803_v55 }
  0x7f   :  { %910 = vmatprep.subr.bf16.mxu0 %v1745_v13  ;;  %v1785_v13 = vld [vmem:[#allocation5 + $0x2a0] ss:$8 sps:$4 sm:$0xff]   ;;  %v125_v15 = vpack.c.bf16 %v76_v12, %v69_v11  ;;  %v82_v33 = vld [vmem:[#allocation2 + $0x98] sm:$0xff] }
  0x80   :  { %v131_v38 = vpack.c.bf16 %v89_v34, %v82_v33  ;;  %v245_v34 = vld [vmem:[%s2152_s2] sm:$0x3] }
  0x81   :  { %876 = vmatmul.mubr.bf16.gmra.mrb[4].mxu0 %v128_v24  ;;  %v1799_v24 = vld [vmem:[#allocation5 + $0x2e4] ss:$8 sps:$4 sm:$0xff]  }
  0x82   :  { %911 = vmatpush1.bf16.msra.mxu0 %v1743_v19  ;;  %885 = vmatprep.mubr.bf16.mxu0 %v136_v29  ;;  %v90_v19 = vld [vmem:[#allocation2 + $0xd8] sm:$0xff]  ;;  %v139_v29 = vpack.c.bf16 %v104_v26, %v97_v25 }
  0x83   :  { %912 = vmatprep.subr.bf16.mxu0 %v1751_v28  ;;  %v132_v22 = vpack.c.bf16 %v90_v19, %v83_v18  ;;  %v1802_v28 = vld [vmem:[#allocation5 + $0x2f4] ss:$8 sps:$4 sm:$0xff]  }
  0x84   :  { %803 = vmatmul.mubr.bf16.gmra.mrb[4].mxu1 %v126_v47  ;;  %v102_v47 = vld [vmem:[#allocation2 + $0x138] sm:$0xff] }
  0x85   :  { %812 = vmatprep.mubr.bf16.mxu1 %v134_v50 }
  0x86   :  { %913 = vmatpush1.bf16.msra.mxu0 %v1749_v31  ;;  %v67_v31 = vld [vmem:[#allocation2 + $0x20] sm:$0xff] }
  0x87   :  { %914 = vmatprep.subr.bf16.mxu0 %v1757_v36  ;;  %v123_v35 = vpack.c.bf16 %v74_v32, %v67_v31  ;;  %v111_v36 = vld [vmem:[#allocation2 + $0x180] sm:$0xff] }
  0x88   :  { %v146_v39 = vpack.c.bf16 %v118_v37, %v111_v36 }
  0x89   :  { %886 = vmatmul.mubr.bf16.gmra.mrb[8].mxu0 %v135_v41  ;;  %v88_v41 = vld [vmem:[#allocation2 + $0xc8] sm:$0xff] }
  0x8a   :  { %915 = vmatpush1.bf16.msra.mxu0 %v1755_v42  ;;  %895 = vmatprep.mubr.bf16.mxu0 %v143_v45  ;;  %v96_v42 = vld [vmem:[#allocation2 + $0x108] sm:$0xff]  ;;  %v130_v44 = vpack.c.bf16 %v88_v41, %v81_v40 }
  0x8b   :  { %916 = vmatprep.subr.bf16.mxu0 %v1763_v46  ;;  %v138_v45 = vpack.c.bf16 %v103_v43, %v96_v42  ;;  %v95_v46 = vld [vmem:[#allocation2 + $0x100] sm:$0xff] }
  0x8c   :  { %813 = vmatmul.mubr.bf16.gmra.mrb[8].mxu1 %v133_v0  ;;  %v137_v50 = vpack.c.bf16 %v102_v47, %v95_v46  ;;  %v1812_v0 = vld [vmem:[#allocation7 + $0x20] sm:$0xff]  }
  0x8d   :  { %822 = vmatprep.mubr.bf16.mxu1 %v141_v2  ;;  %v1814_v2 = vld [vmem:[#allocation7 + $0x28] sm:$0xff]  }
  0x8e   :  { %917 = vmatpush1.bf16.msra.mxu0 %v1761_v48  ;;  %v110_v48 = vld [vmem:[#allocation2 + $0x178] sm:$0xff] }
  0x8f   :  { %918 = vmatprep.subr.bf16.mxu0 %v1769_v49  ;;  %v117_v49 = vld [vmem:[#allocation2 + $0x1b0] sm:$0xff] }
  0x90   :  { %v145_v51 = vpack.c.bf16 %v117_v49, %v110_v48 }
  0x91   :  { %896 = vmatmul.mubr.bf16.gmra.mrb[12].mxu0 %v142_v61  ;;  %v1809_v61 = vld [vmem:[#allocation7 + $0x58] sm:$0xff]  }
  0x92   :  { %919 = vmatpush1.bf16.msra.mxu0 %v1767_v57  ;;  %938 = vmatprep.mubr.bf16.mxu0 %v124_v62  ;;  %v1805_v57 = vld [vmem:[#allocation7 + $0x48] sm:$0xff]   ;;  %v1810_v62 = vld [vmem:[#allocation7 + $0x18] sm:$0xff]  }
  0x93   :  { %920 = vmatprep.subr.bf16.mxu0 %v1775_v60  ;;  %v1808_v60 = vld [vmem:[#allocation7 + $0x10] sm:$0xff]  }
  0x94   :  { %823 = vmatmul.mubr.bf16.gmra.mrb[12].mxu1 %v140_v7 }
  0x95   :  { %1011 = vmatprep.mubr.bf16.mxu1 %v1986_v10 }
  0x96   :  { %921 = vmatpush1.bf16.msra.mxu0 %v1773_v63  ;;  %v1811_v63 = vld [vmem:[#allocation7 + $0x60] sm:$0xff]  }
  0x97   :  { %922 = vmatprep.subr.bf16.mxu0 %v1778_v1  ;;  %v1813_v1 = vld [vmem:[#allocation7 + $0x68] sm:$0xff]  }
  0x9a   :  { %923 = vmatpush1.bf16.msra.mxu0 %v1776_v5  ;;  %v1817_v5 = vld [vmem:[#allocation7 + $0x78] sm:$0xff]  }
  0x9b   :  { %924 = vmatprep.subr.bf16.mxu0 %v1784_v6  ;;  %v1818_v6 = vld [vmem:[#allocation7 + $0x38] sm:$0xff]  }
  0x9c   :  { %1520 = vmatmul.mubr.msk.bf16.vlgmr.msra.gmra.mrb[16].mxu1 %vm747_vm0, %v125_v15 }
  0x9d   :  { %1021 = vmatprep.mubr.bf16.mxu1 %v1986_v10  ;;  %1542 = vmatpush3.bf16.msra.mxu1 %v1804_v56 }
  0x9e   :  { %925 = vmatpush1.bf16.msra.mxu0 %v1782_v8  ;;  %1543 = vmatprep.subr.bf16.mxu1 %v1805_v57 }
  0x9f   :  { %926 = vmatprep.subr.bf16.mxu0 %v1787_v9 }
  0xa1   :  { %1544 = vmatpush3.bf16.msra.mxu1 %v1806_v58 }
  0xa2   :  { %927 = vmatpush1.bf16.msra.mxu0 %v1785_v13  ;;  %1545 = vmatprep.subr.bf16.mxu1 %v1807_v59 }
  0xa3   :  { %928 = vmatprep.subr.bf16.mxu0 %v1790_v14 }
  0xa4   :  { %1521 = vmatmul.mubr.msk.bf16.gmra.mrb[20].mxu1 %vm747_vm0, %v132_v22 }
  0xa5   :  { %1031 = vmatprep.mubr.bf16.mxu1 %v1986_v10  ;;  %1546 = vmatpush3.bf16.msra.mxu1 %v1808_v60 }
  0xa6   :  { %929 = vmatpush1.bf16.msra.mxu0 %v1788_v16  ;;  %1547 = vmatprep.subr.bf16.mxu1 %v1809_v61 }
  0xa7   :  { %930 = vmatprep.subr.bf16.mxu0 %v1793_v17 }
  0xa9   :  { %1548 = vmatpush3.bf16.msra.mxu1 %v1810_v62 }
  0xaa   :  { %931 = vmatpush1.bf16.msra.mxu0 %v1791_v20  ;;  %1549 = vmatprep.subr.bf16.mxu1 %v1811_v63 }
  0xab   :  { %932 = vmatprep.subr.bf16.mxu0 %v1796_v21 }
  0xac   :  { %1522 = vmatmul.mubr.msk.bf16.gmra.mrb[24].mxu1 %vm747_vm0, %v139_v29 }
  0xad   :  { %1041 = vmatprep.mubr.bf16.mxu1 %v1986_v10  ;;  %1550 = vmatpush3.bf16.msra.mxu1 %v1812_v0 }
  0xae   :  { %933 = vmatpush1.bf16.msra.mxu0 %v1794_v23  ;;  %1551 = vmatprep.subr.bf16.mxu1 %v1813_v1 }
  0xaf   :  { %934 = vmatprep.subr.bf16.mxu0 %v1799_v24 }
  0xb1   :  { %1552 = vmatpush3.bf16.msra.mxu1 %v1814_v2 }
  0xb2   :  { %935 = vmatpush1.bf16.msra.mxu0 %v1797_v27  ;;  %1553 = vmatprep.subr.bf16.mxu1 %v1815_v3  ;;  %v247_v27 = vlaneseq }
  0xb3   :  { %936 = vmatprep.subr.bf16.mxu0 %v1802_v28 }
  0xb4   :  { %1523 = vmatmul.mubr.msk.bf16.gmra.mrb[28].mxu1 %vm747_vm0, %v146_v39  ;;  %v248_v28 = vshrl.u32 %v247_v27, 7 }
  0xb5   :  { %1554 = vmatpush3.bf16.msra.mxu1 %v1816_v4 }
  0xb6   :  { %937 = vmatpush1.bf16.msra.mxu0 %v1800_v30  ;;  %1555 = vmatprep.subr.bf16.mxu1 %v1817_v5  ;;  %v249_v33 = vsub.s32 0, %v248_v28 }
  0xb8   :  { %v2080_v36 = vrot.slane %v245_v34, %v249_v33 }
  0xb9   :  { %939 = vmatmul.mubr.bf16.vlgmr.msra.gmra.mrb[0].mxu0 %v123_v35  ;;  %1556 = vmatpush3.bf16.msra.mxu1 %v1818_v6  ;;  %v253_v35 = vsub.s32 1, %v248_v28 }
  0xba   :  { %948 = vmatprep.mubr.bf16.mxu0 %v131_v38 }
  0xbb   :  { %v2084_v38 = vrot.slane %v245_v34, %v253_v35 }
  0xc1   :  { %949 = vmatmul.mubr.bf16.gmra.mrb[4].mxu0 %v130_v44 }
  0xc2   :  { %958 = vmatprep.mubr.bf16.mxu0 %v138_v45 }
  0xc9   :  { %959 = vmatmul.mubr.bf16.gmra.mrb[8].mxu0 %v137_v50 }
  0xca   :  { %968 = vmatprep.mubr.bf16.mxu0 %v145_v51 }
  0xd1   :  { %969 = vmatmul.mubr.bf16.gmra.mrb[12].mxu0 %v144_v54 }
 0x14f   :  { %v794_v7 = vpop.f32.mrb[0].mxu1 }
 0x150   :  { %v796_v8 = vpop.f32.mrb[1].mxu1  ;;  %v795_v42 = vadd.f32 %v794_v7, %v2080_v36 }
 0x151   :  { %v798_v9 = vpop.f32.mrb[2].mxu1  ;;  %v797_v43 = vadd.f32 %v796_v8, %v2084_v38 }
 0x152   :  { %v800_v10 = vpop.f32.mrb[3].mxu1  ;;  %v799_v45 = vadd.f32 %v798_v9, %v2080_v36 }
 0x153   :  { %v801_v48 = vadd.f32 %v800_v10, %v2084_v38 }
 0x157   :  { %v804_v11 = vpop.f32.mrb[4].mxu1 }
 0x158   :  { %v806_v12 = vpop.f32.mrb[5].mxu1  ;;  %v805_v0 = vadd.f32 %v804_v11, %v2080_v36 }
 0x159   :  { %v808_v13 = vpop.f32.mrb[6].mxu1  ;;  %v807_v2 = vadd.f32 %v806_v12, %v2084_v38 }
 0x15a   :  { %v810_v14 = vpop.f32.mrb[7].mxu1  ;;  %v809_v5 = vadd.f32 %v808_v13, %v2080_v36 }
 0x15b   :  { %v811_v8 = vadd.f32 %v810_v14, %v2084_v38 }
 0x15f   :  { %v2061_v15 = vpop.f32.mrb[8].mxu1 }
 0x160   :  { %v2063_v16 = vpop.f32.mrb[9].mxu1  ;;  %v815_v13 = vadd.f32 %v2061_v15, %v2080_v36 }
 0x161   :  { %v2065_v17 = vpop.f32.mrb[10].mxu1  ;;  %v817_v14 = vadd.f32 %v2063_v16, %v2084_v38 }
 0x162   :  { %v2067_v18 = vpop.f32.mrb[11].mxu1 }
 0x167   :  { %v2069_v19 = vpop.f32.mrb[12].mxu1 }
 0x168   :  { %v2071_v20 = vpop.f32.mrb[13].mxu1 }
 0x169   :  { %v2073_v21 = vpop.f32.mrb[14].mxu1 }
 0x16a   :  { %v2075_v22 = vpop.f32.mrb[15].mxu1 }
 0x16f   :  { %v1013_v23 = vpop.f32.mrb[16].mxu1 }
 0x170   :  { %v1015_v24 = vpop.f32.mrb[17].mxu1 }
 0x171   :  { %v1017_v25 = vpop.f32.mrb[18].mxu1 }
 0x172   :  { %v1019_v26 = vpop.f32.mrb[19].mxu1 }
 0x177   :  { %v1023_v29 = vpop.f32.mrb[20].mxu1 }
 0x178   :  { %v1025_v30 = vpop.f32.mrb[21].mxu1 }
 0x179   :  { %v1027_v31 = vpop.f32.mrb[22].mxu1 }
 0x17a   :  { %v1029_v32 = vpop.f32.mrb[23].mxu1 }
 0x17f   :  { %v2082_v37 = vpop.f32.mrb[24].mxu1 }
 0x180   :  { %v2086_v39 = vpop.f32.mrb[25].mxu1 }
 0x181   :  { %v2088_v40 = vpop.f32.mrb[26].mxu1 }
 0x182   :  { %v2090_v41 = vpop.f32.mrb[27].mxu1 }
 0x187   :  { %v2096_v54 = vpop.f32.mrb[28].mxu1 }
 0x188   :  { %v2098_v57 = vpop.f32.mrb[29].mxu1 }
 0x189   :  { %v2100_v60 = vpop.f32.mrb[30].mxu1 }
 0x18a   :  { %v2102_v63 = vpop.f32.mrb[31].mxu1 }
 0x18c   :  { %v940_v44 = vpop.f32.mrb[0].mxu0 }
 0x18d   :  { %v1582_v46 = vadd.f32 %v940_v44, %v795_v42  ;;  %v942_v47 = vpop.f32.mrb[1].mxu0 }
 0x18e   :  { %v1585_v49 = vadd.f32 %v942_v47, %v797_v43  ;;  %v944_v50 = vpop.f32.mrb[2].mxu0 }
 0x18f   :  { %v1583_v51 = vadd.f32 %v1582_v46, %v1013_v23  ;;  %v1588_v52 = vadd.f32 %v944_v50, %v799_v45  ;;  %v946_v53 = vpop.f32.mrb[3].mxu0 }
 0x190   :  { %v1586_v55 = vadd.f32 %v1585_v49, %v1015_v24  ;;  %v1591_v56 = vadd.f32 %v946_v53, %v801_v48 }
 0x191   :  { %v1052_v58 = vmul.f32 0.5, %v1583_v51  ;;  %v1589_v59 = vadd.f32 %v1588_v52, %v1017_v25 }
 0x192   :  { %v1053_v61 = vmul.f32 0.5, %v1586_v55  ;;  %v1592_v62 = vadd.f32 %v1591_v56, %v1019_v26  ;;  %v825_v55 = vadd.f32 %v2069_v19, %v2080_v36 }
 0x193   :  { %1819 = vtanh.f32 %v1052_v58  ;;  %v1054_v1 = vmul.f32 0.5, %v1589_v59 }
 0x194   :  { %1821 = vtanh.f32 %v1053_v61  ;;  %v1055_v3 = vmul.f32 0.5, %v1592_v62  ;;  %v950_v4 = vpop.f32.mrb[4].mxu0 }
 0x195   :  { %1823 = vtanh.f32 %v1054_v1  ;;  %v1594_v6 = vadd.f32 %v950_v4, %v805_v0  ;;  %v952_v7 = vpop.f32.mrb[5].mxu0 }
 0x196   :  { %1825 = vtanh.f32 %v1055_v3  ;;  %v1597_v9 = vadd.f32 %v952_v7, %v807_v2  ;;  %v954_v10 = vpop.f32.mrb[6].mxu0 }
 0x197   :  { %v1595_v23 = vadd.f32 %v1594_v6, %v1023_v29  ;;  %v1600_v24 = vadd.f32 %v954_v10, %v809_v5  ;;  %v956_v11 = vpop.f32.mrb[7].mxu0 }
 0x198   :  { %v1598_v25 = vadd.f32 %v1597_v9, %v1025_v30  ;;  %v1603_v26 = vadd.f32 %v956_v11, %v811_v8  ;;  %v819_v30 = vadd.f32 %v2065_v17, %v2080_v36  ;;  %v831_v9 = vadd.f32 %v2075_v22, %v2084_v38 }
 0x199   :  { %v1056_v27 = vmul.f32 0.5, %v1595_v23  ;;  %v1601_v12 = vadd.f32 %v1600_v24, %v1027_v31 }
 0x19a   :  { %v1057_v28 = vmul.f32 0.5, %v1598_v25  ;;  %v1604_v33 = vadd.f32 %v1603_v26, %v1029_v32  ;;  %v821_v32 = vadd.f32 %v2067_v18, %v2084_v38 }
 0x19b   :  { %1827 = vtanh.f32 %v1056_v27  ;;  %v1058_v34 = vmul.f32 0.5, %v1601_v12 }
 0x19c   :  { %1829 = vtanh.f32 %v1057_v28  ;;  %v1059_v35 = vmul.f32 0.5, %v1604_v33  ;;  %v960_v42 = vpop.f32.mrb[8].mxu0 }
 0x19d   :  { %v1820_v29 = vpop.eup %1819  ;;  %1831 = vtanh.f32 %v1058_v34  ;;  %v1606_v43 = vadd.f32 %v960_v42, %v815_v13  ;;  %v962_v31 = vpop.f32.mrb[9].mxu0 }
 0x19e   :  { %v1822_v44 = vpop.eup %1821  ;;  %v1084_v15 = vmul.f32 0.5, %v1820_v29  ;;  %1833 = vtanh.f32 %v1059_v35  ;;  %v1609_v45 = vadd.f32 %v962_v31, %v817_v14  ;;  %v964_v46 = vpop.f32.mrb[10].mxu0 }
 0x19f   :  { %v1824_v47 = vpop.eup %1823  ;;  %v1085_v16 = vmul.f32 0.5, %v1822_v44  ;;  %v1607_v48 = vadd.f32 %v1606_v43, %v2082_v37  ;;  %v1612_v49 = vadd.f32 %v964_v46, %v819_v30  ;;  %v966_v50 = vpop.f32.mrb[11].mxu0 }
 0x1a0   :  { %v1826_v51 = vpop.eup %1825  ;;  %v1086_v52 = vmul.f32 0.5, %v1824_v47  ;;  %v1610_v17 = vadd.f32 %v1609_v45, %v2086_v39  ;;  %v1615_v53 = vadd.f32 %v966_v50, %v821_v32  ;;  %v1100_v59 = vadd.f32 0.5, %v1084_v15 }
 0x1a1   :  { %v1087_v56 = vmul.f32 0.5, %v1826_v51  ;;  %v1060_v18 = vmul.f32 0.5, %v1607_v48  ;;  %v1613_v58 = vadd.f32 %v1612_v49, %v2088_v40  ;;  %v1101_v1 = vadd.f32 0.5, %v1085_v16 }
 0x1a2   :  { %v1102_v61 = vadd.f32 0.5, %v1086_v52  ;;  %v1061_v62 = vmul.f32 0.5, %v1610_v17  ;;  %v1616_v0 = vadd.f32 %v1615_v53, %v2090_v41  ;;  %v827_v39 = vadd.f32 %v2071_v20, %v2084_v38 }
 0x1a3   :  { %1835 = vtanh.f32 %v1060_v18  ;;  %v1062_v37 = vmul.f32 0.5, %v1613_v58  ;;  %v1103_v2 = vadd.f32 0.5, %v1087_v56  ;;  %v829_v40 = vadd.f32 %v2073_v21, %v2080_v36 }
 0x1a4   :  { %v1116_v3 = vpack.c.bf16 %v1102_v61, %v1100_v59  ;;  %1837 = vtanh.f32 %v1061_v62  ;;  %v1063_v4 = vmul.f32 0.5, %v1616_v0  ;;  %v970_v19 = vpop.f32.mrb[12].mxu0 }
 0x1a5   :  { %v1828_v5 = vpop.eup %1827  ;;  %1839 = vtanh.f32 %v1062_v37  ;;  %v1618_v6 = vadd.f32 %v970_v19, %v825_v55  ;;  %v972_v7 = vpop.f32.mrb[13].mxu0  ;;  %v1117_v8 = vpack.c.bf16 %v1103_v2, %v1101_v1 }
 0x1a6   :  { %v1830_v41 = vpop.eup %1829  ;;  %v1088_v10 = vmul.f32 0.5, %v1828_v5  ;;  %1841 = vtanh.f32 %v1063_v4  ;;  %v1621_v23 = vadd.f32 %v972_v7, %v827_v39  ;;  %v974_v20 = vpop.f32.mrb[14].mxu0  ;;  %v1524_v4 = vld [vmem:[%s2154_s4] ss:$0 sm:$0xff]  ;;  %s1987_s4 = smov [#allocation8]  }
 0x1a7   :  { %v1832_v24 = vpop.eup %1831  ;;  %v1089_v11 = vmul.f32 0.5, %v1830_v41  ;;  %v1619_v25 = vadd.f32 %v1618_v6, %v2096_v54  ;;  %v1624_v26 = vadd.f32 %v974_v20, %v829_v40  ;;  %v976_v27 = vpop.f32.mrb[15].mxu0  ;;  %1291 = vmatprep.mubr.bf16.mxu1 %v1117_v8  ;;  %s1409_s12 = sshll.u32 %s1987_s4, 4  ;;  %s1410_s12 = int_to_ptr.vmem [resolvable:$true] %s1409_s12 }
 0x1a8   :  { %v1834_v21 = vpop.eup %1833  ;;  %v1090_v36 = vmul.f32 0.5, %v1832_v24  ;;  %v1622_v12 = vadd.f32 %v1621_v23, %v2098_v57  ;;  %v1627_v28 = vadd.f32 %v976_v27, %v831_v9  ;;  %1292 = vmatmul.mubr.bf16.vlgmr.msra.gmra.mrb[32].mxu1 %v1116_v3  ;;  %v1104_v14 = vadd.f32 0.5, %v1088_v10  ;;  %s1949_s13 = scalar_lea.vmem %s1410_s12, 1024  ;;  %p1954_p11 = scmp.lt.s32.totalorder %s1410_s12, %s1410_s12 }
 0x1a9   :  { %v1091_v33 = vmul.f32 0.5, %v1834_v21  ;;  %v1064_v13 = vmul.f32 0.5, %v1619_v25  ;;  %v1625_v22 = vadd.f32 %v1624_v26, %v2100_v60  ;;  %v1105_v42 = vadd.f32 0.5, %v1089_v11  ;;  %p1950_p10 = scmp.ne.s32.totalorder %s1410_s12, %s1949_s13  ;;  %p1955_p12 = scmp.lt.s32.totalorder %s1949_s13, %s1949_s13 }
 0x1aa   :  { %v1065_v38 = vmul.f32 0.5, %v1622_v12  ;;  %v1628_v34 = vadd.f32 %v1627_v28, %v2102_v63  ;;  %v1106_v35 = vadd.f32 0.5, %v1090_v36 }
 0x1ab   :  { %1843 = vtanh.f32 %v1064_v13  ;;  %v1066_v54 = vmul.f32 0.5, %v1625_v22  ;;  %v1107_v29 = vadd.f32 0.5, %v1091_v33  ;;  %p1956_p13 = por %p1955_p12, %p1954_p11 }
 0x1ac   :  { %1845 = vtanh.f32 %v1065_v38  ;;  %v1067_v30 = vmul.f32 0.5, %v1628_v34  ;;  %v1118_v43 = vpack.c.bf16 %v1106_v35, %v1104_v14 }
 0x1ad   :  { %v1836_v31 = vpop.eup %1835  ;;  %1847 = vtanh.f32 %v1066_v54  ;;  %v1119_v57 = vpack.c.bf16 %v1107_v29, %v1105_v42  ;;  %p1957_p0 = pnand %p1956_p13, %p1950_p10 }
 0x1ae   :  { %v1838_v44 = vpop.eup %1837  ;;  %v1092_v32 = vmul.f32 0.5, %v1836_v31  ;;  %1849 = vtanh.f32 %v1067_v30 }
 0x1af   :  { %v1840_v15 = vpop.eup %1839  ;;  %v1093_v60 = vmul.f32 0.5, %v1838_v44  ;;  %1299 = vmatprep.mubr.bf16.mxu1 %v1119_v57 }
 0x1b0   :  { %v1842_v45 = vpop.eup %1841  ;;  %v1094_v63 = vmul.f32 0.5, %v1840_v15  ;;  %1300 = vmatmul.mubr.bf16.gmra.mrb[36].mxu1 %v1118_v43  ;;  %v1108_v47 = vadd.f32 0.5, %v1092_v32 }
 0x1b1   :  { %v1095_v46 = vmul.f32 0.5, %v1842_v45  ;;  %v1109_v48 = vadd.f32 0.5, %v1093_v60 }
 0x1b2   :  { %v1110_v16 = vadd.f32 0.5, %v1094_v63 }
 0x1b3   :  { %v1111_v49 = vadd.f32 0.5, %v1095_v46 }
 0x1b4   :  { %v1120_v50 = vpack.c.bf16 %v1110_v16, %v1108_v47 }
 0x1b5   :  { %v1844_v51 = vpop.eup %1843  ;;  %v1121_v52 = vpack.c.bf16 %v1111_v49, %v1109_v48 }
 0x1b6   :  { %v1846_v17 = vpop.eup %1845  ;;  %v1096_v53 = vmul.f32 0.5, %v1844_v51 }
 0x1b7   :  { %v1848_v55 = vpop.eup %1847  ;;  %v1097_v56 = vmul.f32 0.5, %v1846_v17  ;;  %1307 = vmatprep.mubr.bf16.mxu1 %v1121_v52 }
 0x1b8   :  { %v1850_v18 = vpop.eup %1849  ;;  %v1098_v58 = vmul.f32 0.5, %v1848_v55  ;;  %1308 = vmatmul.mubr.bf16.gmra.mrb[40].mxu1 %v1120_v50  ;;  %v1112_v61 = vadd.f32 0.5, %v1096_v53 }
 0x1b9   :  { %v1099_v59 = vmul.f32 0.5, %v1850_v18  ;;  %v1113_v0 = vadd.f32 0.5, %v1097_v56 }
 0x1ba   :  { %v1114_v62 = vadd.f32 0.5, %v1098_v58 }
 0x1bb   :  { %v1115_v37 = vadd.f32 0.5, %v1099_v59 }
 0x1bc   :  { %v1122_v1 = vpack.c.bf16 %v1114_v62, %v1112_v61 }
 0x1bd   :  { %v1123_v2 = vpack.c.bf16 %v1115_v37, %v1113_v0 }
 0x1bf   :  { %1315 = vmatprep.mubr.bf16.mxu1 %v1123_v2 }
 0x1c0   :  { %1316 = vmatmul.mubr.bf16.gmra.mrb[44].mxu1 %v1122_v1 }
 0x27b   :  { %v1557_v39 = vpop.f32.mrb[32].mxu1 }
 0x27c   :  { %v1558_v3 = vpop.f32.mrb[33].mxu1 }
 0x27d   :  { %v1559_v19 = vadd.f32 %v1558_v3, %v1557_v39  ;;  %v1560_v5 = vpop.f32.mrb[34].mxu1 }
 0x27e   :  { %v1561_v40 = vpop.f32.mrb[35].mxu1 }
 0x27f   :  { %v1562_v6 = vadd.f32 %v1561_v40, %v1560_v5  ;;  %v1294_v7 = vadd.f32 %v1559_v19, %v1524_v4 }
 0x281   :  { %1324 = vmax.xlane.f32.xlu0 %v1294_v7  ;;  %v1297_v41 = vadd.f32 %v1562_v6, %v1524_v4 }
 0x283   :  { %v1563_v8 = vpop.f32.mrb[36].mxu1 }
 0x284   :  { %v1564_v9 = vpop.f32.mrb[37].mxu1 }
 0x285   :  { %v1565_v10 = vadd.f32 %v1564_v9, %v1563_v8  ;;  %v1566_v23 = vpop.f32.mrb[38].mxu1  ;;  %1326 = vmax.xlane.f32.xlu0 %v1297_v41 }
 0x286   :  { %v1567_v20 = vpop.f32.mrb[39].mxu1 }
 0x287   :  { %v1568_v24 = vadd.f32 %v1567_v20, %v1566_v23  ;;  %v1302_v11 = vadd.f32 %v1565_v10, %v1524_v4 }
 0x289   :  { %1328 = vmax.xlane.f32.xlu1 %v1302_v11  ;;  %v1305_v26 = vadd.f32 %v1568_v24, %v1524_v4 }
 0x28b   :  { %v1569_v25 = vpop.f32.mrb[40].mxu1 }
 0x28c   :  { %v1570_v27 = vpop.f32.mrb[41].mxu1 }
 0x28d   :  { %v1571_v21 = vadd.f32 %v1570_v27, %v1569_v25  ;;  %v1572_v36 = vpop.f32.mrb[42].mxu1  ;;  %1330 = vmax.xlane.f32.xlu1 %v1305_v26 }
 0x28e   :  { %v1573_v12 = vpop.f32.mrb[43].mxu1 }
 0x28f   :  { %v1574_v28 = vadd.f32 %v1573_v12, %v1572_v36  ;;  %v1310_v33 = vadd.f32 %v1571_v21, %v1524_v4 }
 0x291   :  { %1332 = vmax.xlane.f32.xlu0 %v1310_v33  ;;  %v1313_v13 = vadd.f32 %v1574_v28, %v1524_v4 }
 0x293   :  { %v1575_v22 = vpop.f32.mrb[44].mxu1  ;;  %1334 = vmax.xlane.f32.xlu1 %v1313_v13 }
 0x294   :  { %v1576_v38 = vpop.f32.mrb[45].mxu1 }
 0x295   :  { %v1577_v34 = vadd.f32 %v1576_v38, %v1575_v22  ;;  %v1578_v14 = vpop.f32.mrb[46].mxu1 }
 0x296   :  { %v1579_v35 = vpop.f32.mrb[47].mxu1 }
 0x297   :  { %v1580_v54 = vadd.f32 %v1579_v35, %v1578_v14  ;;  %v1318_v42 = vadd.f32 %v1577_v34, %v1524_v4 }
 0x299   :  { %1336 = vmax.xlane.f32.xlu0 %v1318_v42  ;;  %v1321_v29 = vadd.f32 %v1580_v54, %v1524_v4 }
 0x29b   :  { %1338 = vmax.xlane.f32.xlu1 %v1321_v29 }
 0x30e   :  { %v1325_v30 = vpop.xlane.xlu0 %1324 }
 0x30f   :  { %v1340_v43 = vsub.f32 %v1294_v7, %v1325_v30 }
 0x311   :  { %v1348_v31 = vmul.f32 1.442695, %v1340_v43 }
 0x312   :  { %v1327_v57 = vpop.xlane.xlu0 %1326 }
 0x313   :  { %1851 = vpow2.f32 %v1348_v31  ;;  %v1341_v44 = vsub.f32 %v1297_v41, %v1327_v57 }
 0x315   :  { %v1350_v32 = vmul.f32 1.442695, %v1341_v44 }
 0x316   :  { %v1329_v15 = vpop.xlane.xlu1 %1328 }
 0x317   :  { %1853 = vpow2.f32 %v1350_v32  ;;  %v1342_v60 = vsub.f32 %v1302_v11, %v1329_v15 }
 0x319   :  { %v1352_v45 = vmul.f32 1.442695, %v1342_v60 }
 0x31a   :  { %v1331_v63 = vpop.xlane.xlu1 %1330 }
 0x31b   :  { %1855 = vpow2.f32 %v1352_v45  ;;  %v1343_v46 = vsub.f32 %v1305_v26, %v1331_v63 }
 0x31d   :  { %v1852_v47 = vpop.eup %1851  ;;  %v1354_v16 = vmul.f32 1.442695, %v1343_v46 }
 0x31e   :  { %1364 = vadd.xlane.f32.xlu0 %v1852_v47  ;;  %v1333_v48 = vpop.xlane.xlu0 %1332 }
 0x31f   :  { %1857 = vpow2.f32 %v1354_v16  ;;  %v1344_v49 = vsub.f32 %v1310_v33, %v1333_v48 }
 0x320   :  { %v1335_v50 = vpop.xlane.xlu1 %1334 }
 0x321   :  { %v1854_v51 = vpop.eup %1853  ;;  %v1356_v52 = vmul.f32 1.442695, %v1344_v49  ;;  %v1345_v17 = vsub.f32 %v1313_v13, %v1335_v50 }
 0x322   :  { %1366 = vadd.xlane.f32.xlu1 %v1854_v51 }
 0x323   :  { %1859 = vpow2.f32 %v1356_v52  ;;  %v1358_v53 = vmul.f32 1.442695, %v1345_v17 }
 0x325   :  { %v1856_v55 = vpop.eup %1855  ;;  %1861 = vpow2.f32 %v1358_v53 }
 0x326   :  { %1368 = vadd.xlane.f32.xlu0 %v1856_v55  ;;  %v1337_v56 = vpop.xlane.xlu0 %1336 }
 0x327   :  { %v1346_v18 = vsub.f32 %v1318_v42, %v1337_v56 }
 0x328   :  { %v1339_v58 = vpop.xlane.xlu1 %1338 }
 0x329   :  { %v1858_v59 = vpop.eup %1857  ;;  %v1360_v61 = vmul.f32 1.442695, %v1346_v18  ;;  %v1347_v62 = vsub.f32 %v1321_v29, %v1339_v58 }
 0x32a   :  { %1370 = vadd.xlane.f32.xlu1 %v1858_v59 }
 0x32b   :  { %1863 = vpow2.f32 %v1360_v61  ;;  %v1362_v0 = vmul.f32 1.442695, %v1347_v62 }
 0x32d   :  { %v1860_v37 = vpop.eup %1859  ;;  %1865 = vpow2.f32 %v1362_v0 }
 0x32e   :  { %1372 = vadd.xlane.f32.xlu0 %v1860_v37 }
 0x32f   :  { %v1862_v1 = vpop.eup %1861 }
 0x330   :  { %1374 = vadd.xlane.f32.xlu1 %v1862_v1 }
 0x335   :  { %v1864_v2 = vpop.eup %1863 }
 0x336   :  { %1376 = vadd.xlane.f32.xlu0 %v1864_v2 }
 0x337   :  { %v1866_v39 = vpop.eup %1865 }
 0x338   :  { %1378 = vadd.xlane.f32.xlu1 %v1866_v39 }
 0x3ab   :  { %v1365_v3 = vpop.xlane.xlu0 %1364 }
 0x3ac   :  { %1867 = vrcp.f32 %v1365_v3 }
 0x3af   :  { %v1367_v4 = vpop.xlane.xlu1 %1366 }
 0x3b0   :  { %1869 = vrcp.f32 %v1367_v4 }
 0x3b3   :  { %v1369_v19 = vpop.xlane.xlu0 %1368 }
 0x3b4   :  { %1871 = vrcp.f32 %v1369_v19 }
 0x3b6   :  { %v1868_v5 = vpop.eup %1867 }
 0x3b7   :  { %v1381_v40 = vmul.f32 %v1868_v5, %v1852_v47  ;;  %v1371_v6 = vpop.xlane.xlu1 %1370 }
 0x3b8   :  { %1873 = vrcp.f32 %v1371_v6 }
 0x3b9   :  { %1396 = vst [vmem:[#allocation8] sm:$0xff] %v1381_v40 }
 0x3ba   :  { %v1870_v7 = vpop.eup %1869 }
 0x3bb   :  { %v1383_v8 = vmul.f32 %v1870_v7, %v1854_v51  ;;  %v1373_v41 = vpop.xlane.xlu0 %1372 }
 0x3bc   :  { %1875 = vrcp.f32 %v1373_v41 }
 0x3bd   :  { %1397 = vst [vmem:[#allocation8 + $0x8] sm:$0xff] %v1383_v8  ;;  %v1375_v9 = vpop.xlane.xlu1 %1374 }
 0x3be   :  { %v1872_v10 = vpop.eup %1871  ;;  %1877 = vrcp.f32 %v1375_v9 }
 0x3bf   :  { %v1385_v23 = vmul.f32 %v1872_v10, %v1856_v55 }
 0x3c1   :  { %1398 = vst [vmem:[#allocation8 + $0x10] sm:$0xff] %v1385_v23 }
 0x3c2   :  { %v1874_v20 = vpop.eup %1873 }
 0x3c3   :  { %v1387_v24 = vmul.f32 %v1874_v20, %v1858_v59  ;;  %v1377_v11 = vpop.xlane.xlu0 %1376 }
 0x3c4   :  { %1879 = vrcp.f32 %v1377_v11 }
 0x3c5   :  { %1399 = vst [vmem:[#allocation8 + $0x18] sm:$0xff] %v1387_v24  ;;  %v1379_v25 = vpop.xlane.xlu1 %1378 }
 0x3c6   :  { %v1876_v26 = vpop.eup %1875  ;;  %1881 = vrcp.f32 %v1379_v25 }
 0x3c7   :  { %v1389_v27 = vmul.f32 %v1876_v26, %v1860_v37 }
 0x3c8   :  { %v1878_v21 = vpop.eup %1877 }
 0x3c9   :  { %1400 = vst [vmem:[#allocation8 + $0x20] sm:$0xff] %v1389_v27  ;;  %v1391_v36 = vmul.f32 %v1878_v21, %v1862_v1 }
 0x3cb   :  { %1401 = vst [vmem:[#allocation8 + $0x28] sm:$0xff] %v1391_v36 }
 0x3ce   :  { %v1880_v12 = vpop.eup %1879 }
 0x3cf   :  { %v1393_v28 = vmul.f32 %v1880_v12, %v1864_v2 }
 0x3d0   :  { %v1882_v33 = vpop.eup %1881 }
 0x3d1   :  { %1402 = vst [vmem:[#allocation8 + $0x30] sm:$0xff] %v1393_v28  ;;  %v1395_v13 = vmul.f32 %v1882_v33, %v1866_v39 }
 0x3d3   :  { %1403 = vst [vmem:[#allocation8 + $0x38] sm:$0xff] %v1395_v13 }
 0x3d4   :  { %1960 = shalt.err (!%p1957_p0)
}
 0x3d5   :  { %s1961_s16 = scalar_lea.hbm %s2155_s5, 1024 }
 0x3d6   :  { %p1962_p1 = scmp.ne.s32.totalorder %s2155_s5, %s1961_s16  ;;  %p1965_p2 = scmp.lt.u32.totalorder %s1961_s16, %s2155_s5 }
 0x3d8   :  { %p1967_p3 = pnand %p1965_p2, %p1962_p1 }
 0x3da   :  { %1970 = shalt.err (!%p1967_p3)
}
 0x3db   :  { %1415 = dma.vmem_to_hbm [thread:$0]  %s1410_s12, 1024, %s2155_s5, [#allocation4], %s1978_s28, %s1978_s28, %s1979_s29  }
 0x3dc   :  { %1975 = dma.done.wait [#allocation4], 1024  }
 0x3dd   :  { %1976 = vsyncadd [#allocation4], 4294966272 }
 0x3de   :  { %1419 = vsyncpa [#allocation3], 1 }
 0x3df   :  { %1420 = vsyncpa [#allocation6], 1 }
 0x3e0   :  { %1421 = vsyncpa [#allocation4], 1 }

</bundles_post_ra>
